<compile_context>
chip_gen: v7x
topology: tpu7x:2x2x1
jax: 0.10.0
libtpu: 0.0.40
codegen_flags: <defaults>
</compile_context>

<pallas_src>
import functools

import numpy as np

import jax
import jax.numpy as jnp
from jax import lax
from jax.experimental import pallas as pl
from jax.experimental.pallas import tpu as pltpu


def _permute_tile(x, *, W, w_mid, jig_v, h_shift):
    """Apply the (remaining) cut-perm to a (rblk, L) tile.

    Each row is one flattened channel plane (or one contiguous H-half of it).
    h_shift != 0 performs the top/bottom H-half swap as a lane roll; it is 0
    whenever the swap was already folded into the BlockSpec index_map.
    """
    rows, L = x.shape
    perm = x

    if h_shift:
        # Even H -> h_shift == L/2, exact under either roll-direction
        # convention.  (Odd H additionally relies on pltpu.roll matching
        # jnp.roll's direction.)
        perm = pltpu.roll(perm, shift=h_shift, axis=1)

    if jig_v:
        # Swap left/right W-halves of every image row: a roll by w_mid inside
        # every group of W lanes == select between two full-lane rolls.
        # The select mask is derived from a thin (1, L) iota rolled with the
        # same primitive, so it is exact regardless of the hardware roll
        # direction (for the usual even W); it is broadcast as int32 so no
        # mask(i1) broadcast support is required.
        shift_a = L - w_mid
        shift_b = W - w_mid
        col = lax.broadcasted_iota(jnp.int32, (1, L), 1)
        lane = col % W
        desired_src = col - lane + (lane + w_mid) % W           # (1, L)
        sel_thin = pltpu.roll(col, shift=shift_a, axis=1) == desired_src
        sel = jnp.broadcast_to(sel_thin.astype(jnp.int32), (rows, L))
        cand_a = pltpu.roll(perm, shift=shift_a, axis=1)
        cand_b = pltpu.roll(perm, shift=shift_b, axis=1)
        perm = jnp.where(sel != 0, cand_a, cand_b)
    return perm


def _cutperm_kernel(x_ref, o_ref, *, W, w_mid, jig_v, h_shift):
    o_ref[...] = _permute_tile(
        x_ref[...], W=W, w_mid=w_mid, jig_v=jig_v, h_shift=h_shift)


def _cutperm_blend_kernel(mask_ref, x_ref, o_ref, *, W, w_mid, jig_v, h_shift):
    x = x_ref[...]
    perm = _permute_tile(x, W=W, w_mid=w_mid, jig_v=jig_v, h_shift=h_shift)
    m = mask_ref[...].astype(x.dtype)          # (rblk, 1), values in {0, 1}
    o_ref[...] = x * m + perm * (1 - m)        # identical to the torch formula


def cutperm_pallas(x, mask=None, *, aug_index, blend):
    """x: (B, C, H, W); mask: int32[B] (1 keeps the original sample, used only
    when blend=True); aug_index: static Python int; blend: static bool."""
    B, C, H, W = x.shape
    HW = H * W
    R = B * C
    itemsize = jnp.dtype(x.dtype).itemsize
    aug = int(aug_index)
    h_mid, w_mid = H // 2, W // 2
    jig_h = (aug // 2) == 1 and h_mid > 0
    jig_v = (aug % 2) == 1 and w_mid > 0

    x_rows = x.reshape(R, HW)                 # free view: lane-dense last dim

    # Deterministic path: H-half swap purely in the index_map (two HW/2 lane
    # blocks, cross-mapped).  Blend path keeps the roll form because the
    # kernel also needs the *original* block for kept samples.
    half_split = (jig_h and not blend and H % 2 == 0 and (HW // 2) % 128 == 0)
    if half_split:
        L, n_lane_blocks, h_shift = HW // 2, 2, 0
    else:
        L, n_lane_blocks = HW, 1
        h_shift = (H - h_mid) * W if jig_h else 0    # == HW/2 for even H

    # Row blocking on the folded B*C axis: largest sublane-pack multiple that
    # keeps a block around ~1 MiB (>=85% of HBM roofline on v5e/v6e/v7x while
    # leaving room for double buffering + jig_v temporaries in scoped VMEM).
    pack = 8 * max(1, 4 // itemsize)          # 8 f32/i32, 16 bf16, 32 int8
    target_bytes = 1 << 20
    rows_fit = max(1, target_bytes // (L * itemsize))
    if rows_fit >= R:
        rblk = R                              # single full-dim row block
    else:
        rblk = min(R, max(pack, (rows_fit // pack) * pack))
    grid = (pl.cdiv(R, rblk), n_lane_blocks)  # ragged last row block is fine

    if half_split:
        x_index_map = lambda r, h: (r, 1 - h)
        o_index_map = lambda r, h: (r, h)
    else:
        x_index_map = lambda r, h: (r, 0)
        o_index_map = lambda r, h: (r, 0)

    in_specs = []
    args = []
    if blend:
        assert mask is not None
        # Per-sample mask expanded to one scalar per row of the folded axis.
        mask_rows = jnp.repeat(mask.astype(jnp.int32), C).reshape(R, 1)
        in_specs.append(pl.BlockSpec((rblk, 1), lambda r, h: (r, 0)))
        args.append(mask_rows)
        kernel = functools.partial(_cutperm_blend_kernel, W=W, w_mid=w_mid,
                                   jig_v=jig_v, h_shift=h_shift)
    else:
        kernel = functools.partial(_cutperm_kernel, W=W, w_mid=w_mid,
                                   jig_v=jig_v, h_shift=h_shift)
    in_specs.append(pl.BlockSpec((rblk, L), x_index_map))
    args.append(x_rows)

    out_rows = pl.pallas_call(
        kernel,
        out_shape=jax.ShapeDtypeStruct((R, HW), x.dtype),
        grid=grid,
        in_specs=in_specs,
        out_specs=pl.BlockSpec((rblk, L), o_index_map),
        compiler_params=pltpu.CompilerParams(
            dimension_semantics=("parallel", "parallel")),
        cost_estimate=pl.CostEstimate(
            flops=0, transcendentals=0,
            bytes_accessed=2 * R * HW * itemsize),
        # NOTE: pass input_output_aliases={len(args)-1: 0} when the caller can
        # donate x (halves HBM pressure); not used here, the demo reuses x.
    )(*args)
    return out_rows.reshape(B, C, H, W)


class CutPermPallas:
    """JAX/Pallas port of the CutPerm nn.Module (forward pass)."""

    def __init__(self, max_range=4):
        self.max_range = max_range
        self.prob = 0.5

    def __call__(self, x, aug_index=None, key=None):
        B = x.shape[0]
        if aug_index is None:
            # Random path: aug selects one of 4 specialized kernels, so it is
            # drawn host-side (mirrors np.random.randint in the torch module);
            # this call is therefore not meant to sit under jax.jit.
            if key is not None:
                k_aug, k_mask = jax.random.split(key)
                aug = int(jax.random.randint(k_aug, (), 0, 4))
                mask = jax.random.bernoulli(
                    k_mask, p=self.prob, shape=(B,)).astype(jnp.int32)
            else:
                aug = int(np.random.randint(4))
                mask = jnp.asarray(
                    np.random.rand(B) < self.prob, dtype=jnp.int32)
            return cutperm_pallas(x, mask, aug_index=aug, blend=True)
        aug = int(aug_index) % self.max_range
        return cutperm_pallas(x, aug_index=aug, blend=False)


def _cutperm_ref(x, aug_index):
    """Pure-JAX reference of torch _cutperm for verification."""
    _, _, H, W = x.shape
    h_mid, w_mid = H // 2, W // 2
    out = x
    if aug_index // 2 == 1:
        out = jnp.concatenate([out[:, :, h_mid:, :], out[:, :, :h_mid, :]], axis=2)
    if aug_index % 2 == 1:
        out = jnp.concatenate([out[:, :, :, w_mid:], out[:, :, :, :w_mid]], axis=3)
    return out


if __name__ == "__main__":
    key = jax.random.PRNGKey(0)
    x = jax.random.normal(key, (2, 4, 16, 16), dtype=jnp.float32)

    mod = CutPermPallas(max_range=4)

    # Deterministic path: all 4 aug variants vs. the pure-JAX reference.
    for aug_index in range(4):
        out = jax.block_until_ready(mod(x, aug_index=aug_index))
        ref = _cutperm_ref(x, aug_index)
        assert out.shape == x.shape and out.dtype == x.dtype
        assert jnp.allclose(out, ref), f"mismatch at aug_index={aug_index}"

    # Random path: each sample must equal the original or one of the cutperms.
    out_rand = jax.block_until_ready(
        mod(x, aug_index=None, key=jax.random.PRNGKey(1)))
    refs = [x] + [_cutperm_ref(x, a) for a in range(4)]
    for i in range(x.shape[0]):
        assert any(bool(jnp.allclose(out_rand[i], r[i])) for r in refs), (
            f"random-path sample {i} is not a valid blend output")

    print("KERNEL_OK")
</pallas_src>

<mosaic_0001>
module attributes {stable_mosaic.version = 11 : i64} {
  func.func @_cutperm_kernel(%arg0: i32, %arg1: i32, %arg2: memref<8x256xf32, #tpu.memory_space<vmem>>, %arg3: memref<8x256xf32, #tpu.memory_space<vmem>>) attributes {dimension_semantics = [#tpu.dimension_semantics<parallel>, #tpu.dimension_semantics<parallel>], iteration_bounds = array<i64: 1, 1>, scalar_prefetch = 0 : i64, scratch_operands = 0 : i64, tpu.core_type = #tpu.core_type<tc>, window_params = [{transform_indices = @transform_0, window_bounds = array<i64: 8, 256>}, {transform_indices = @transform_1, window_bounds = array<i64: 8, 256>}]} {
    %c0 = arith.constant 0 : index
    %c0_0 = arith.constant 0 : index
    %0 = vector.load %arg2[%c0, %c0_0] : memref<8x256xf32, #tpu.memory_space<vmem>>, vector<8x256xf32>
    %c0_1 = arith.constant 0 : index
    %c0_2 = arith.constant 0 : index
    %1 = vector.load %arg3[%c0_1, %c0_2] : memref<8x256xf32, #tpu.memory_space<vmem>>, vector<8x256xf32>
    tpu.vector_store %arg3[%c0_1, %c0_2], %0 {strides = array<i32>} : memref<8x256xf32, #tpu.memory_space<vmem>>, vector<8x256xf32>,
    return
  }
  func.func @transform_0(%arg0: i32, %arg1: i32) -> (i32, i32) {
    %c0_i32 = arith.constant 0 : i32
    %c0_i32_0 = arith.constant 0 : i32
    return %arg0, %c0_i32 : i32, i32
  }
  func.func @transform_1(%arg0: i32, %arg1: i32) -> (i32, i32) {
    %c0_i32 = arith.constant 0 : i32
    %c0_i32_0 = arith.constant 0 : i32
    return %arg0, %c0_i32 : i32, i32
  }
}

</mosaic_0001>

<bundles_post_ra>
// kernel: tpu_custom_call.1
= control target key start
LH: loop header
LB: loop body
LE: loop exit
PB: predicated region body
PF: predicated region fallthrough
CT: control target
= control target key end

     0   :  { %6 = vsyncpa [#allocation3], 0  ;;  %s126_s0 = inlined_call_operand.hbm [shape: f32[8,256], index: 0, kind: input, shape index: {}]   ;;  %s127_s1 = inlined_call_operand.hbm [shape: f32[8,256], index: 1, kind: output, shape index: {}]  }
   0x1   :  { %7 = vsyncpa [#allocation4], 0  ;;  %s90_s6 = smov [#allocation2]   ;;  %s42_s10 = scalar_lea.hbm %s126_s0, 256 }
   0x2   :  { %s14_s7 = sshll.u32 %s90_s6, 4  ;;  %p43_p0 = scmp.ne.s32.totalorder %s126_s0, %s42_s10  ;;  %s15_s7 = int_to_ptr.vmem [resolvable:$true] %s14_s7 }
   0x3   :  { %p46_p1 = scmp.lt.u32.totalorder %s42_s10, %s126_s0 }
   0x5   :  { %p48_p2 = pnand %p46_p1, %p43_p0 }
   0x7   :  { %51 = shalt.err (!%p48_p2)
}
   0x8   :  { %s52_s15 = scalar_lea.vmem %s15_s7, 256  ;;  %p57_p4 = scmp.lt.s32.totalorder %s15_s7, %s15_s7 }
   0x9   :  { %p53_p3 = scmp.ne.s32.totalorder %s15_s7, %s52_s15  ;;  %p58_p5 = scmp.lt.s32.totalorder %s52_s15, %s52_s15 }
   0xb   :  { %p59_p6 = por %p58_p5, %p57_p4 }
   0xd   :  { %p60_p7 = pnand %p59_p6, %p53_p3 }
   0xf   :  { %63 = shalt.err (!%p60_p7)
}
  0x10   :  { %17 = dma.hbm_to_vmem [thread:$0]  %s126_s0, 256, %s15_s7, [#allocation3]  }
  0x11   :  { %86 = dma.done.wait [#allocation3], 256  }
  0x12   :  { %87 = vsyncadd [#allocation3], 4294967040  ;;  %s91_s18 = smov [#allocation5]   ;;  %v21_v0 = vld [vmem:[#allocation2] sm:$0xff]  ;;  %v22_v1 = vld [vmem:[#allocation2 + $0x8] sm:$0xff] }
  0x13   :  { %s31_s19 = sshll.u32 %s91_s18, 4  ;;  %23 = vst [vmem:[#allocation5] sm:$0xff] %v21_v0  ;;  %24 = vst [vmem:[#allocation5 + $0x8] sm:$0xff] %v22_v1  ;;  %s32_s19 = int_to_ptr.vmem [resolvable:$true] %s31_s19 }
  0x14   :  { %s64_s20 = scalar_lea.vmem %s32_s19, 256  ;;  %p69_p9 = scmp.lt.s32.totalorder %s32_s19, %s32_s19 }
  0x15   :  { %p65_p8 = scmp.ne.s32.totalorder %s32_s19, %s64_s20  ;;  %p70_p10 = scmp.lt.s32.totalorder %s64_s20, %s64_s20 }
  0x17   :  { %p71_p11 = por %p70_p10, %p69_p9 }
  0x19   :  { %p72_p12 = pnand %p71_p11, %p65_p8 }
  0x1b   :  { %75 = shalt.err (!%p72_p12)
}
  0x1c   :  { %s76_s0 = scalar_lea.hbm %s127_s1, 256 }
  0x1d   :  { %p77_p13 = scmp.ne.s32.totalorder %s127_s1, %s76_s0  ;;  %p80_p0 = scmp.lt.u32.totalorder %s76_s0, %s127_s1 }
  0x1f   :  { %p82_p1 = pnand %p80_p0, %p77_p13 }
  0x21   :  { %85 = shalt.err (!%p82_p1)
}
  0x22   :  { %34 = dma.vmem_to_hbm [thread:$0]  %s32_s19, 256, %s127_s1, [#allocation4]  }
  0x23   :  { %88 = dma.done.wait [#allocation4], 256  }
  0x24   :  { %89 = vsyncadd [#allocation4], 4294967040 }
  0x25   :  { %38 = vsyncpa [#allocation3], 1 }
  0x26   :  { %39 = vsyncpa [#allocation4], 1 }

</bundles_post_ra>
